<compile_context>
chip_gen: v6e
topology: v6e:2x2x1
jax: 0.10.0
libtpu: 0.0.40
codegen_flags: <defaults>
</compile_context>

<pallas_src>
import functools
import math

import jax
import jax.numpy as jnp
from jax import lax
from jax.experimental import pallas as pl
from jax.experimental.pallas import tpu as pltpu


# ----------------------------------------------------------------------------
# Fused kernel: one program = one (batch, L-tile).
#   Projects Q/K/V full-width, runs per-head attention, applies the output
#   projection, and stores a lane-dense (tl, d_model) tile.
# ----------------------------------------------------------------------------
def _fused_attn_kernel(q_ref, k_ref, v_ref,
                       wq_ref, bq_ref, wk_ref, bk_ref, wv_ref, bv_ref,
                       wo_ref, bo_ref,
                       o_ref,
                       *, n_heads, d_keys, d_values):
    x_q = q_ref[0]                      # (tl, d_model)
    x_k = k_ref[0]                      # (S,  d_model)
    x_v = v_ref[0]                      # (S,  d_model)

    # Full-width projections (MXU), f32 accumulation.
    q = jnp.dot(x_q, wq_ref[...], preferred_element_type=jnp.float32) + bq_ref[...]  # (tl, H*dk)
    k = jnp.dot(x_k, wk_ref[...], preferred_element_type=jnp.float32) + bk_ref[...]  # (S,  H*dk)
    v = jnp.dot(x_v, wv_ref[...], preferred_element_type=jnp.float32) + bv_ref[...]  # (S,  H*dv)

    scale = 1.0 / math.sqrt(d_keys)

    head_outs = []
    for h in range(n_heads):            # static loop, traced once
        q_h = q[:, h * d_keys:(h + 1) * d_keys]        # (tl, dk)
        k_h = k[:, h * d_keys:(h + 1) * d_keys]        # (S,  dk)
        v_h = v[:, h * d_values:(h + 1) * d_values]    # (S,  dv)

        # Contract on dk directly — no explicit K transpose.
        s = lax.dot_general(q_h, k_h,
                            dimension_numbers=(((1,), (1,)), ((), ())),
                            preferred_element_type=jnp.float32) * scale   # (tl, S)

        # Numerically-stable softmax over keys, f32 throughout.
        s = s - jnp.max(s, axis=-1, keepdims=True)
        p = jnp.exp(s)
        inv = pl.reciprocal(jnp.sum(p, axis=-1, keepdims=True), approx=True)
        a = p * inv

        head_outs.append(jnp.dot(a, v_h, preferred_element_type=jnp.float32))  # (tl, dv)

    concat = jnp.concatenate(head_outs, axis=-1)       # (tl, H*dv), f32

    # Fused output projection -> lane-dense (tl, d_model) store.
    y = jnp.dot(concat.astype(wo_ref.dtype), wo_ref[...],
                preferred_element_type=jnp.float32) + bo_ref[...]
    o_ref[0] = y.astype(o_ref.dtype)


def _choose_l_tile(L):
    """Largest convenient query tile: whole L for small seqs, else a big divisor."""
    if L <= 512:
        return L
    for t in (512, 256, 128):
        if L % t == 0:
            return t
    return L


def attention_layer(queries, keys, values, params, n_heads):
    """Pallas implementation of AttentionLayer.forward (single fused kernel)."""
    N, L, d_model = queries.shape
    _, S, _ = keys.shape
    H = n_heads

    wq, bq = params["wq"], params["bq"]       # (d_model, H*dk), (H*dk,)
    wk, bk = params["wk"], params["bk"]
    wv, bv = params["wv"], params["bv"]
    wo, bo = params["wo"], params["bo"]       # (H*dv, d_model), (d_model,)

    d_keys = wq.shape[1] // H
    d_values = wv.shape[1] // H

    tl = _choose_l_tile(L)
    n_l_tiles = pl.cdiv(L, tl)
    dtype = queries.dtype

    kernel = functools.partial(_fused_attn_kernel,
                               n_heads=H, d_keys=d_keys, d_values=d_values)

    out = pl.pallas_call(
        kernel,
        out_shape=jax.ShapeDtypeStruct((N, L, d_model), dtype),
        grid=(N, n_l_tiles),
        in_specs=[
            pl.BlockSpec((1, tl, d_model), lambda n, l: (n, l, 0)),   # queries tile
            pl.BlockSpec((1, S, d_model), lambda n, l: (n, 0, 0)),    # keys (full)
            pl.BlockSpec((1, S, d_model), lambda n, l: (n, 0, 0)),    # values (full)
            pl.BlockSpec((d_model, H * d_keys), lambda n, l: (0, 0)),    # Wq
            pl.BlockSpec((1, H * d_keys), lambda n, l: (0, 0)),          # bq
            pl.BlockSpec((d_model, H * d_keys), lambda n, l: (0, 0)),    # Wk
            pl.BlockSpec((1, H * d_keys), lambda n, l: (0, 0)),          # bk
            pl.BlockSpec((d_model, H * d_values), lambda n, l: (0, 0)),  # Wv
            pl.BlockSpec((1, H * d_values), lambda n, l: (0, 0)),        # bv
            pl.BlockSpec((H * d_values, d_model), lambda n, l: (0, 0)),  # Wo
            pl.BlockSpec((1, d_model), lambda n, l: (0, 0)),             # bo
        ],
        out_specs=pl.BlockSpec((1, tl, d_model), lambda n, l: (n, l, 0)),
        compiler_params=pltpu.CompilerParams(
            dimension_semantics=("parallel", "parallel")),
    )(queries, keys, values,
      wq, bq.reshape(1, -1), wk, bk.reshape(1, -1), wv, bv.reshape(1, -1),
      wo, bo.reshape(1, -1))

    return out


def _reference(queries, keys, values, params, n_heads):
    """Pure-JAX reference of the same forward pass (for correctness check)."""
    N, L, d_model = queries.shape
    _, S, _ = keys.shape
    H = n_heads
    dk = params["wq"].shape[1] // H
    dv = params["wv"].shape[1] // H
    q = (queries @ params["wq"] + params["bq"]).reshape(N, L, H, dk)
    k = (keys @ params["wk"] + params["bk"]).reshape(N, S, H, dk)
    v = (values @ params["wv"] + params["bv"]).reshape(N, S, H, dv)
    s = jnp.einsum("nlhe,nshe->nhls", q, k) / math.sqrt(dk)
    a = jax.nn.softmax(s, axis=-1)
    o = jnp.einsum("nhls,nshd->nlhd", a, v).reshape(N, L, H * dv)
    return o @ params["wo"] + params["bo"]


if __name__ == "__main__":
    # Small shapes consistent with the module.
    N, L, S = 2, 8, 8
    d_model, n_heads = 32, 4
    d_keys = d_model // n_heads
    d_values = d_model // n_heads

    key = jax.random.PRNGKey(0)
    ks = jax.random.split(key, 12)

    def init(k, shape, fan_in):
        bound = 1.0 / math.sqrt(fan_in)
        return jax.random.uniform(k, shape, jnp.float32, -bound, bound)

    params = {
        "wq": init(ks[0], (d_model, d_keys * n_heads), d_model),
        "bq": init(ks[1], (d_keys * n_heads,), d_model),
        "wk": init(ks[2], (d_model, d_keys * n_heads), d_model),
        "bk": init(ks[3], (d_keys * n_heads,), d_model),
        "wv": init(ks[4], (d_model, d_values * n_heads), d_model),
        "bv": init(ks[5], (d_values * n_heads,), d_model),
        "wo": init(ks[6], (d_values * n_heads, d_model), d_values * n_heads),
        "bo": init(ks[7], (d_model,), d_values * n_heads),
    }

    queries = jax.random.normal(ks[8], (N, L, d_model), jnp.float32)
    keys = jax.random.normal(ks[9], (N, S, d_model), jnp.float32)
    values = jax.random.normal(ks[10], (N, S, d_model), jnp.float32)

    out = attention_layer(queries, keys, values, params, n_heads)
    out = jax.block_until_ready(out)

    ref = _reference(queries, keys, values, params, n_heads)
    assert out.shape == (N, L, d_model)
    # Tolerance slightly relaxed vs 1e-4 because the softmax denominator uses
    # the EUP approx reciprocal (pl.reciprocal(..., approx=True)).
    assert jnp.allclose(out, ref, atol=1e-3, rtol=1e-3), "mismatch vs JAX reference"

    print("KERNEL_OK")
</pallas_src>

<mosaic_0001>
module attributes {stable_mosaic.version = 11 : i64} {
  func.func @_fused_attn_kernel(%arg0: i32, %arg1: i32, %arg2: memref<1x8x32xf32, #tpu.memory_space<vmem>>, %arg3: memref<1x8x32xf32, #tpu.memory_space<vmem>>, %arg4: memref<1x8x32xf32, #tpu.memory_space<vmem>>, %arg5: memref<32x32xf32, #tpu.memory_space<vmem>>, %arg6: memref<1x32xf32, #tpu.memory_space<vmem>>, %arg7: memref<32x32xf32, #tpu.memory_space<vmem>>, %arg8: memref<1x32xf32, #tpu.memory_space<vmem>>, %arg9: memref<32x32xf32, #tpu.memory_space<vmem>>, %arg10: memref<1x32xf32, #tpu.memory_space<vmem>>, %arg11: memref<32x32xf32, #tpu.memory_space<vmem>>, %arg12: memref<1x32xf32, #tpu.memory_space<vmem>>, %arg13: memref<1x8x32xf32, #tpu.memory_space<vmem>>) attributes {dimension_semantics = [#tpu.dimension_semantics<parallel>, #tpu.dimension_semantics<parallel>], iteration_bounds = array<i64: 2, 1>, scalar_prefetch = 0 : i64, scratch_operands = 0 : i64, tpu.core_type = #tpu.core_type<tc>, window_params = [{transform_indices = @transform_0, window_bounds = array<i64: 1, 8, 32>}, {transform_indices = @transform_1, window_bounds = array<i64: 1, 8, 32>}, {transform_indices = @transform_2, window_bounds = array<i64: 1, 8, 32>}, {pipeline_mode = #tpu.pipeline_mode<synchronous>, transform_indices = @transform_3, window_bounds = array<i64: 32, 32>}, {pipeline_mode = #tpu.pipeline_mode<synchronous>, transform_indices = @transform_4, window_bounds = array<i64: 1, 32>}, {pipeline_mode = #tpu.pipeline_mode<synchronous>, transform_indices = @transform_5, window_bounds = array<i64: 32, 32>}, {pipeline_mode = #tpu.pipeline_mode<synchronous>, transform_indices = @transform_6, window_bounds = array<i64: 1, 32>}, {pipeline_mode = #tpu.pipeline_mode<synchronous>, transform_indices = @transform_7, window_bounds = array<i64: 32, 32>}, {pipeline_mode = #tpu.pipeline_mode<synchronous>, transform_indices = @transform_8, window_bounds = array<i64: 1, 32>}, {pipeline_mode = #tpu.pipeline_mode<synchronous>, transform_indices = @transform_9, window_bounds = array<i64: 32, 32>}, {pipeline_mode = #tpu.pipeline_mode<synchronous>, transform_indices = @transform_10, window_bounds = array<i64: 1, 32>}, {transform_indices = @transform_11, window_bounds = array<i64: 1, 8, 32>}]} {
    %c0 = arith.constant 0 : index
    %c0_0 = arith.constant 0 : index
    %c0_1 = arith.constant 0 : index
    %0 = vector.load %arg2[%c0, %c0_0, %c0_1] : memref<1x8x32xf32, #tpu.memory_space<vmem>>, vector<1x8x32xf32>
    %1 = vector.shape_cast %0 : vector<1x8x32xf32> to vector<8x32xf32>
    %c0_2 = arith.constant 0 : index
    %c0_3 = arith.constant 0 : index
    %c0_4 = arith.constant 0 : index
    %2 = vector.load %arg3[%c0_2, %c0_3, %c0_4] : memref<1x8x32xf32, #tpu.memory_space<vmem>>, vector<1x8x32xf32>
    %3 = vector.shape_cast %2 : vector<1x8x32xf32> to vector<8x32xf32>
    %c0_5 = arith.constant 0 : index
    %c0_6 = arith.constant 0 : index
    %c0_7 = arith.constant 0 : index
    %4 = vector.load %arg4[%c0_5, %c0_6, %c0_7] : memref<1x8x32xf32, #tpu.memory_space<vmem>>, vector<1x8x32xf32>
    %5 = vector.shape_cast %4 : vector<1x8x32xf32> to vector<8x32xf32>
    %c0_8 = arith.constant 0 : index
    %c0_9 = arith.constant 0 : index
    %6 = vector.load %arg5[%c0_8, %c0_9] : memref<32x32xf32, #tpu.memory_space<vmem>>, vector<32x32xf32>
    %cst = arith.constant dense<0.000000e+00> : vector<8x32xf32>
    %7 = tpu.matmul %1, %6, %cst {dimension_numbers = #tpu.dot_dimension_numbers<[1], [0], [0], [1], [0, 0, 1, 1], [], []>} : vector<8x32xf32>, vector<32x32xf32>, vector<8x32xf32> -> vector<8x32xf32>
    %c0_10 = arith.constant 0 : index
    %c0_11 = arith.constant 0 : index
    %8 = vector.load %arg6[%c0_10, %c0_11] : memref<1x32xf32, #tpu.memory_space<vmem>>, vector<1x32xf32>
    %9 = vector.broadcast %8 : vector<1x32xf32> to vector<8x32xf32>
    %10 = arith.addf %7, %9 : vector<8x32xf32>
    %c0_12 = arith.constant 0 : index
    %c0_13 = arith.constant 0 : index
    %11 = vector.load %arg7[%c0_12, %c0_13] : memref<32x32xf32, #tpu.memory_space<vmem>>, vector<32x32xf32>
    %cst_14 = arith.constant dense<0.000000e+00> : vector<8x32xf32>
    %12 = tpu.matmul %3, %11, %cst_14 {dimension_numbers = #tpu.dot_dimension_numbers<[1], [0], [0], [1], [0, 0, 1, 1], [], []>} : vector<8x32xf32>, vector<32x32xf32>, vector<8x32xf32> -> vector<8x32xf32>
    %c0_15 = arith.constant 0 : index
    %c0_16 = arith.constant 0 : index
    %13 = vector.load %arg8[%c0_15, %c0_16] : memref<1x32xf32, #tpu.memory_space<vmem>>, vector<1x32xf32>
    %14 = vector.broadcast %13 : vector<1x32xf32> to vector<8x32xf32>
    %15 = arith.addf %12, %14 : vector<8x32xf32>
    %c0_17 = arith.constant 0 : index
    %c0_18 = arith.constant 0 : index
    %16 = vector.load %arg9[%c0_17, %c0_18] : memref<32x32xf32, #tpu.memory_space<vmem>>, vector<32x32xf32>
    %cst_19 = arith.constant dense<0.000000e+00> : vector<8x32xf32>
    %17 = tpu.matmul %5, %16, %cst_19 {dimension_numbers = #tpu.dot_dimension_numbers<[1], [0], [0], [1], [0, 0, 1, 1], [], []>} : vector<8x32xf32>, vector<32x32xf32>, vector<8x32xf32> -> vector<8x32xf32>
    %c0_20 = arith.constant 0 : index
    %c0_21 = arith.constant 0 : index
    %18 = vector.load %arg10[%c0_20, %c0_21] : memref<1x32xf32, #tpu.memory_space<vmem>>, vector<1x32xf32>
    %19 = vector.broadcast %18 : vector<1x32xf32> to vector<8x32xf32>
    %20 = arith.addf %17, %19 : vector<8x32xf32>
    %21 = vector.extract_strided_slice %10 {offsets = [0, 0], sizes = [8, 8], strides = [1, 1]} : vector<8x32xf32> to vector<8x8xf32>
    %22 = vector.extract_strided_slice %15 {offsets = [0, 0], sizes = [8, 8], strides = [1, 1]} : vector<8x32xf32> to vector<8x8xf32>
    %23 = vector.extract_strided_slice %20 {offsets = [0, 0], sizes = [8, 8], strides = [1, 1]} : vector<8x32xf32> to vector<8x8xf32>
    %cst_22 = arith.constant dense<0.000000e+00> : vector<8x8xf32>
    %24 = tpu.matmul %21, %22, %cst_22 {dimension_numbers = #tpu.dot_dimension_numbers<[1], [1], [0], [0], [0, 0, 1, 0], [], []>} : vector<8x8xf32>, vector<8x8xf32>, vector<8x8xf32> -> vector<8x8xf32>
    %cst_23 = arith.constant 0.353553385 : f32
    %25 = vector.broadcast %cst_23 : f32 to vector<8x8xf32>
    %26 = arith.mulf %24, %25 : vector<8x8xf32>
    %cst_24 = arith.constant dense<0xFF800000> : vector<8xf32>
    %27 = vector.multi_reduction <maximumf>, %26, %cst_24 [1] : vector<8x8xf32> to vector<8xf32>
    %28 = vector.shape_cast %27 : vector<8xf32> to vector<8x1xf32>
    %29 = vector.broadcast %28 : vector<8x1xf32> to vector<8x8xf32>
    %30 = arith.subf %26, %29 : vector<8x8xf32>
    %31 = math.exp %30 : vector<8x8xf32>
    %cst_25 = arith.constant dense<0.000000e+00> : vector<8xf32>
    %32 = vector.multi_reduction <add>, %31, %cst_25 [1] : vector<8x8xf32> to vector<8xf32>
    %33 = vector.shape_cast %32 : vector<8xf32> to vector<8x1xf32>
    %34 = tpu.reciprocal %33 {approx = true} : vector<8x1xf32> -> vector<8x1xf32>
    %35 = vector.broadcast %34 : vector<8x1xf32> to vector<8x8xf32>
    %36 = arith.mulf %31, %35 : vector<8x8xf32>
    %cst_26 = arith.constant dense<0.000000e+00> : vector<8x8xf32>
    %37 = tpu.matmul %36, %23, %cst_26 {dimension_numbers = #tpu.dot_dimension_numbers<[1], [0], [0], [1], [0, 0, 1, 1], [], []>} : vector<8x8xf32>, vector<8x8xf32>, vector<8x8xf32> -> vector<8x8xf32>
    %38 = vector.extract_strided_slice %10 {offsets = [0, 8], sizes = [8, 8], strides = [1, 1]} : vector<8x32xf32> to vector<8x8xf32>
    %39 = vector.extract_strided_slice %15 {offsets = [0, 8], sizes = [8, 8], strides = [1, 1]} : vector<8x32xf32> to vector<8x8xf32>
    %40 = vector.extract_strided_slice %20 {offsets = [0, 8], sizes = [8, 8], strides = [1, 1]} : vector<8x32xf32> to vector<8x8xf32>
    %cst_27 = arith.constant dense<0.000000e+00> : vector<8x8xf32>
    %41 = tpu.matmul %38, %39, %cst_27 {dimension_numbers = #tpu.dot_dimension_numbers<[1], [1], [0], [0], [0, 0, 1, 0], [], []>} : vector<8x8xf32>, vector<8x8xf32>, vector<8x8xf32> -> vector<8x8xf32>
    %cst_28 = arith.constant 0.353553385 : f32
    %42 = vector.broadcast %cst_28 : f32 to vector<8x8xf32>
    %43 = arith.mulf %41, %42 : vector<8x8xf32>
    %cst_29 = arith.constant dense<0xFF800000> : vector<8xf32>
    %44 = vector.multi_reduction <maximumf>, %43, %cst_29 [1] : vector<8x8xf32> to vector<8xf32>
    %45 = vector.shape_cast %44 : vector<8xf32> to vector<8x1xf32>
    %46 = vector.broadcast %45 : vector<8x1xf32> to vector<8x8xf32>
    %47 = arith.subf %43, %46 : vector<8x8xf32>
    %48 = math.exp %47 : vector<8x8xf32>
    %cst_30 = arith.constant dense<0.000000e+00> : vector<8xf32>
    %49 = vector.multi_reduction <add>, %48, %cst_30 [1] : vector<8x8xf32> to vector<8xf32>
    %50 = vector.shape_cast %49 : vector<8xf32> to vector<8x1xf32>
    %51 = tpu.reciprocal %50 {approx = true} : vector<8x1xf32> -> vector<8x1xf32>
    %52 = vector.broadcast %51 : vector<8x1xf32> to vector<8x8xf32>
    %53 = arith.mulf %48, %52 : vector<8x8xf32>
    %cst_31 = arith.constant dense<0.000000e+00> : vector<8x8xf32>
    %54 = tpu.matmul %53, %40, %cst_31 {dimension_numbers = #tpu.dot_dimension_numbers<[1], [0], [0], [1], [0, 0, 1, 1], [], []>} : vector<8x8xf32>, vector<8x8xf32>, vector<8x8xf32> -> vector<8x8xf32>
    %55 = vector.extract_strided_slice %10 {offsets = [0, 16], sizes = [8, 8], strides = [1, 1]} : vector<8x32xf32> to vector<8x8xf32>
    %56 = vector.extract_strided_slice %15 {offsets = [0, 16], sizes = [8, 8], strides = [1, 1]} : vector<8x32xf32> to vector<8x8xf32>
    %57 = vector.extract_strided_slice %20 {offsets = [0, 16], sizes = [8, 8], strides = [1, 1]} : vector<8x32xf32> to vector<8x8xf32>
    %cst_32 = arith.constant dense<0.000000e+00> : vector<8x8xf32>
    %58 = tpu.matmul %55, %56, %cst_32 {dimension_numbers = #tpu.dot_dimension_numbers<[1], [1], [0], [0], [0, 0, 1, 0], [], []>} : vector<8x8xf32>, vector<8x8xf32>, vector<8x8xf32> -> vector<8x8xf32>
    %cst_33 = arith.constant 0.353553385 : f32
    %59 = vector.broadcast %cst_33 : f32 to vector<8x8xf32>
    %60 = arith.mulf %58, %59 : vector<8x8xf32>
    %cst_34 = arith.constant dense<0xFF800000> : vector<8xf32>
    %61 = vector.multi_reduction <maximumf>, %60, %cst_34 [1] : vector<8x8xf32> to vector<8xf32>
    %62 = vector.shape_cast %61 : vector<8xf32> to vector<8x1xf32>
    %63 = vector.broadcast %62 : vector<8x1xf32> to vector<8x8xf32>
    %64 = arith.subf %60, %63 : vector<8x8xf32>
    %65 = math.exp %64 : vector<8x8xf32>
    %cst_35 = arith.constant dense<0.000000e+00> : vector<8xf32>
    %66 = vector.multi_reduction <add>, %65, %cst_35 [1] : vector<8x8xf32> to vector<8xf32>
    %67 = vector.shape_cast %66 : vector<8xf32> to vector<8x1xf32>
    %68 = tpu.reciprocal %67 {approx = true} : vector<8x1xf32> -> vector<8x1xf32>
    %69 = vector.broadcast %68 : vector<8x1xf32> to vector<8x8xf32>
    %70 = arith.mulf %65, %69 : vector<8x8xf32>
    %cst_36 = arith.constant dense<0.000000e+00> : vector<8x8xf32>
    %71 = tpu.matmul %70, %57, %cst_36 {dimension_numbers = #tpu.dot_dimension_numbers<[1], [0], [0], [1], [0, 0, 1, 1], [], []>} : vector<8x8xf32>, vector<8x8xf32>, vector<8x8xf32> -> vector<8x8xf32>
    %72 = vector.extract_strided_slice %10 {offsets = [0, 24], sizes = [8, 8], strides = [1, 1]} : vector<8x32xf32> to vector<8x8xf32>
    %73 = vector.extract_strided_slice %15 {offsets = [0, 24], sizes = [8, 8], strides = [1, 1]} : vector<8x32xf32> to vector<8x8xf32>
    %74 = vector.extract_strided_slice %20 {offsets = [0, 24], sizes = [8, 8], strides = [1, 1]} : vector<8x32xf32> to vector<8x8xf32>
    %cst_37 = arith.constant dense<0.000000e+00> : vector<8x8xf32>
    %75 = tpu.matmul %72, %73, %cst_37 {dimension_numbers = #tpu.dot_dimension_numbers<[1], [1], [0], [0], [0, 0, 1, 0], [], []>} : vector<8x8xf32>, vector<8x8xf32>, vector<8x8xf32> -> vector<8x8xf32>
    %cst_38 = arith.constant 0.353553385 : f32
    %76 = vector.broadcast %cst_38 : f32 to vector<8x8xf32>
    %77 = arith.mulf %75, %76 : vector<8x8xf32>
    %cst_39 = arith.constant dense<0xFF800000> : vector<8xf32>
    %78 = vector.multi_reduction <maximumf>, %77, %cst_39 [1] : vector<8x8xf32> to vector<8xf32>
    %79 = vector.shape_cast %78 : vector<8xf32> to vector<8x1xf32>
    %80 = vector.broadcast %79 : vector<8x1xf32> to vector<8x8xf32>
    %81 = arith.subf %77, %80 : vector<8x8xf32>
    %82 = math.exp %81 : vector<8x8xf32>
    %cst_40 = arith.constant dense<0.000000e+00> : vector<8xf32>
    %83 = vector.multi_reduction <add>, %82, %cst_40 [1] : vector<8x8xf32> to vector<8xf32>
    %84 = vector.shape_cast %83 : vector<8xf32> to vector<8x1xf32>
    %85 = tpu.reciprocal %84 {approx = true} : vector<8x1xf32> -> vector<8x1xf32>
    %86 = vector.broadcast %85 : vector<8x1xf32> to vector<8x8xf32>
    %87 = arith.mulf %82, %86 : vector<8x8xf32>
    %cst_41 = arith.constant dense<0.000000e+00> : vector<8x8xf32>
    %88 = tpu.matmul %87, %74, %cst_41 {dimension_numbers = #tpu.dot_dimension_numbers<[1], [0], [0], [1], [0, 0, 1, 1], [], []>} : vector<8x8xf32>, vector<8x8xf32>, vector<8x8xf32> -> vector<8x8xf32>
    %89 = tpu.concatenate %37, %54, %71, %88 in 1 : vector<8x8xf32>, vector<8x8xf32>, vector<8x8xf32>, vector<8x8xf32> -> vector<8x32xf32>
    %c0_42 = arith.constant 0 : index
    %c0_43 = arith.constant 0 : index
    %90 = vector.load %arg11[%c0_42, %c0_43] : memref<32x32xf32, #tpu.memory_space<vmem>>, vector<32x32xf32>
    %cst_44 = arith.constant dense<0.000000e+00> : vector<8x32xf32>
    %91 = tpu.matmul %89, %90, %cst_44 {dimension_numbers = #tpu.dot_dimension_numbers<[1], [0], [0], [1], [0, 0, 1, 1], [], []>} : vector<8x32xf32>, vector<32x32xf32>, vector<8x32xf32> -> vector<8x32xf32>
    %c0_45 = arith.constant 0 : index
    %c0_46 = arith.constant 0 : index
    %92 = vector.load %arg12[%c0_45, %c0_46] : memref<1x32xf32, #tpu.memory_space<vmem>>, vector<1x32xf32>
    %93 = vector.broadcast %92 : vector<1x32xf32> to vector<8x32xf32>
    %94 = arith.addf %91, %93 : vector<8x32xf32>
    %c0_47 = arith.constant 0 : index
    %c0_48 = arith.constant 0 : index
    %c0_49 = arith.constant 0 : index
    %95 = vector.load %arg13[%c0_47, %c0_48, %c0_49] : memref<1x8x32xf32, #tpu.memory_space<vmem>>, vector<1x8x32xf32>
    %96 = vector.shape_cast %95 : vector<1x8x32xf32> to vector<8x32xf32>
    %97 = vector.shape_cast %94 : vector<8x32xf32> to vector<1x8x32xf32>
    tpu.vector_store %arg13[%c0_47, %c0_48, %c0_49], %97 {strides = array<i32>} : memref<1x8x32xf32, #tpu.memory_space<vmem>>, vector<1x8x32xf32>,
    return
  }
  func.func @transform_0(%arg0: i32, %arg1: i32) -> (i32, i32, i32) {
    %c0_i32 = arith.constant 0 : i32
    %c0_i32_0 = arith.constant 0 : i32
    return %arg0, %arg1, %c0_i32 : i32, i32, i32
  }
  func.func @transform_1(%arg0: i32, %arg1: i32) -> (i32, i32, i32) {
    %c0_i32 = arith.constant 0 : i32
    %c0_i32_0 = arith.constant 0 : i32
    %c0_i32_1 = arith.constant 0 : i32
    return %arg0, %c0_i32, %c0_i32_0 : i32, i32, i32
  }
  func.func @transform_2(%arg0: i32, %arg1: i32) -> (i32, i32, i32) {
    %c0_i32 = arith.constant 0 : i32
    %c0_i32_0 = arith.constant 0 : i32
    %c0_i32_1 = arith.constant 0 : i32
    return %arg0, %c0_i32, %c0_i32_0 : i32, i32, i32
  }
  func.func @transform_3(%arg0: i32, %arg1: i32) -> (i32, i32) {
    %c0_i32 = arith.constant 0 : i32
    %c0_i32_0 = arith.constant 0 : i32
    %c0_i32_1 = arith.constant 0 : i32
    return %c0_i32, %c0_i32_0 : i32, i32
  }
  func.func @transform_4(%arg0: i32, %arg1: i32) -> (i32, i32) {
    %c0_i32 = arith.constant 0 : i32
    %c0_i32_0 = arith.constant 0 : i32
    %c0_i32_1 = arith.constant 0 : i32
    return %c0_i32, %c0_i32_0 : i32, i32
  }
  func.func @transform_5(%arg0: i32, %arg1: i32) -> (i32, i32) {
    %c0_i32 = arith.constant 0 : i32
    %c0_i32_0 = arith.constant 0 : i32
    %c0_i32_1 = arith.constant 0 : i32
    return %c0_i32, %c0_i32_0 : i32, i32
  }
  func.func @transform_6(%arg0: i32, %arg1: i32) -> (i32, i32) {
    %c0_i32 = arith.constant 0 : i32
    %c0_i32_0 = arith.constant 0 : i32
    %c0_i32_1 = arith.constant 0 : i32
    return %c0_i32, %c0_i32_0 : i32, i32
  }
  func.func @transform_7(%arg0: i32, %arg1: i32) -> (i32, i32) {
    %c0_i32 = arith.constant 0 : i32
    %c0_i32_0 = arith.constant 0 : i32
    %c0_i32_1 = arith.constant 0 : i32
    return %c0_i32, %c0_i32_0 : i32, i32
  }
  func.func @transform_8(%arg0: i32, %arg1: i32) -> (i32, i32) {
    %c0_i32 = arith.constant 0 : i32
    %c0_i32_0 = arith.constant 0 : i32
    %c0_i32_1 = arith.constant 0 : i32
    return %c0_i32, %c0_i32_0 : i32, i32
  }
  func.func @transform_9(%arg0: i32, %arg1: i32) -> (i32, i32) {
    %c0_i32 = arith.constant 0 : i32
    %c0_i32_0 = arith.constant 0 : i32
    %c0_i32_1 = arith.constant 0 : i32
    return %c0_i32, %c0_i32_0 : i32, i32
  }
  func.func @transform_10(%arg0: i32, %arg1: i32) -> (i32, i32) {
    %c0_i32 = arith.constant 0 : i32
    %c0_i32_0 = arith.constant 0 : i32
    %c0_i32_1 = arith.constant 0 : i32
    return %c0_i32, %c0_i32_0 : i32, i32
  }
  func.func @transform_11(%arg0: i32, %arg1: i32) -> (i32, i32, i32) {
    %c0_i32 = arith.constant 0 : i32
    %c0_i32_0 = arith.constant 0 : i32
    return %arg0, %arg1, %c0_i32 : i32, i32, i32
  }
}

</mosaic_0001>

<bundles_post_ra>
// kernel: tpu_custom_call.1
= control target key start
LH: loop header
LB: loop body
LE: loop exit
PB: predicated region body
PF: predicated region fallthrough
CT: control target
= control target key end

     0   :  { %s2783_s0 = inlined_call_operand.hbm [shape: f32[2,8,32], index: 0, kind: input, shape index: {}]   ;;  %s2784_s1 = inlined_call_operand.hbm [shape: f32[2,8,32], index: 1, kind: input, shape index: {}]   ;;  %s2785_s2 = inlined_call_operand.hbm [shape: f32[2,8,32], index: 2, kind: input, shape index: {}]   ;;  %s2786_s3 = inlined_call_operand.hbm [shape: f32[32,32], index: 3, kind: input, shape index: {}]   ;;  %s2787_s4 = inlined_call_operand.vmem [shape: f32[1,32], index: 4, kind: input, shape index: {}]   ;;  %s2788_s5 = inlined_call_operand.hbm [shape: f32[32,32], index: 5, kind: input, shape index: {}]   ;;  %s2789_s6 = inlined_call_operand.vmem [shape: f32[1,32], index: 6, kind: input, shape index: {}]   ;;  %s2790_s7 = inlined_call_operand.hbm [shape: f32[32,32], index: 7, kind: input, shape index: {}]   ;;  %s2791_s8 = inlined_call_operand.vmem [shape: f32[1,32], index: 8, kind: input, shape index: {}]   ;;  %s2792_s9 = inlined_call_operand.hbm [shape: f32[32,32], index: 9, kind: input, shape index: {}]   ;;  %s2793_s10 = inlined_call_operand.vmem [shape: f32[1,32], index: 10, kind: input, shape index: {}]   ;;  %s2794_s11 = inlined_call_operand.hbm [shape: f32[2,8,32], index: 11, kind: output, shape index: {}]  }
   0x1   :  { %2813 = sst [smem:[#allocation27_spill]] %s2784_s1 }
   0x2   :  { %2814 = sst [smem:[#allocation28_spill]] %s2786_s3 }
   0x3   :  { %2815 = sst [smem:[#allocation29_spill]] %s2788_s5 }
   0x4   :  { %2816 = sst [smem:[#allocation30_spill]] %s2790_s7 }
   0x5   :  { %2817 = sst [smem:[#allocation31_spill]] %s2793_s10 }
   0x6   :  { %2818 = sst [smem:[#allocation32_spill]] %s2794_s11 }
   0x7   :  { %16 = vsyncpa [#allocation3], 0 }
   0x8   :  { %18 = vsyncpa [#allocation3 + $0x1], 0 }
   0x9   :  { %19 = vsyncpa [#allocation6], 0 }
   0xa   :  { %21 = vsyncpa [#allocation6 + $0x1], 0 }
   0xb   :  { %22 = vsyncpa [#allocation9], 0 }
   0xc   :  { %23 = vsyncpa [#allocation12], 0 }
   0xd   :  { %24 = vsyncpa [#allocation4], 0 }
   0xe   :  { %26 = vsyncpa [#allocation4 + $0x1], 0  ;;  %s2409_s17 = smov 0   ;;  %s2411_s18 = smov 0  }
   0xf   :  { %s2413_s19 = smov 0   ;;  %s2415_s20 = smov 0  }
  0x10   :  { %s2417_s21 = smov 0   ;;  %s2419_s22 = smov 0  }
  0x11 LB: > { %2819 = sst [smem:[#allocation20_spill]] %s2309_s17  ;;  %s2440_s23 = sadd.s32 4294967295, %s2329_s22   ;;  %s2329_s22 = sphi %s2419_s22, %s32_s22   ;;  %s2325_s21 = sphi %s2417_s21, %s2859_s21   ;;  %s2321_s20 = sphi %s2415_s20, %s2858_s20   ;;  %s2317_s19 = sphi %s2413_s19, %s2862_s19   ;;  %s2313_s18 = sphi %s2411_s18, %s2861_s18   ;;  %s2309_s17 = sphi %s2409_s17, %s2860_s17  }
  0x12   : > { %2820 = sst [smem:[#allocation21_spill]] %s2325_s21  ;;  %p1745_p0 = scmp.ge.s32.totalorder %s2329_s22, 1 }
  0x13   : > { %2821 = sst [smem:[#allocation22_spill]] %s2329_s22  ;;  %p2807_p1 = scmp.eq.s32.totalorder %s2440_s23, 0 }
  0x14   : > { %p325_p2 = scmp.lt.s32.totalorder %s2329_s22, 3  ;;  %s2331_s25 = smov [#allocation8]  }
  0x15   : > { %s337_s26 = sshll.u32 %s2331_s25, 4  ;;  %s2332_s28 = smov [#allocation11]   ;;  %s338_s26 = int_to_ptr.vmem [resolvable:$true] %s337_s26 }
  0x16   : > { %p2445_p3 = pnand %p1745_p0, %p325_p2  ;;  %s369_s29 = sshll.u32 %s2332_s28, 4  ;;  %s370_s29 = int_to_ptr.vmem [resolvable:$true] %s369_s29 }
  0x17   : > { %s2060_s30 = scalar_lea.vmem %s338_s26, 512  ;;  %p2068_p11 = scmp.lt.s32.totalorder %s338_s26, %s338_s26 }
  0x18   : > { %p1934_p4 = pneg %p2445_p3  ;;  %p2061_p8 = scmp.ne.s32.totalorder %s338_s26, %s2060_s30 }
  0x19   : > { %p2069_p12 = scmp.lt.s32.totalorder %s2060_s30, %s2060_s30 }
  0x1a   : > { %p2454_p6 = pnand %p1934_p4, %p2807_p1 }
  0x1b   : > { %p2070_p13 = por %p2069_p12, %p2068_p11 }
  0x1c   : > { %p2808_p7 = pneg %p2454_p6 }
  0x1e   : > { %p2063_p9 = pnand %p2061_p8, %p2808_p7 }
  0x20   : > { %p2064_p10 = pneg %p2063_p9 }
  0x22   : > { %p2071_p0 = pnand %p2070_p13, %p2064_p10 }
  0x24   : > { %2074 = shalt.err (!%p2071_p0)
}
  0x25   : > { %s2795_s12 = smov 128   ;;  %s2797_s13 = smov 8  }
  0x26   : > { %s2824_s3 = sld [smem:[#allocation28_spill]]  ;;  %s2086_s16 = scalar_lea.vmem %s370_s29, 512 }
  0x27   : > { %p2087_p2 = scmp.ne.s32.totalorder %s370_s29, %s2086_s16  ;;  %p2094_p9 = scmp.lt.s32.totalorder %s370_s29, %s370_s29 }
  0x28   : > { %p2095_p10 = scmp.lt.s32.totalorder %s2086_s16, %s2086_s16 }
  0x29   : > { %p2089_p4 = pnand %p2087_p2, %p2808_p7 }
  0x2a   : > { %p2096_p11 = por %p2095_p10, %p2094_p9 }
  0x2b   : > { %p2090_p8 = pneg %p2089_p4 }
  0x2c   : > { %1937 = dma.hbm_to_vmem [thread:$0]  (!%p2454_p6), %s2824_s3, 512, %s338_s26, [#allocation9], %s2795_s12, %s2795_s12, %s2797_s13  }
  0x2d   : > { %p2097_p12 = pnand %p2096_p11, %p2090_p8 }
  0x2f   : > { %2100 = shalt.err (!%p2097_p12)
}
  0x30   : > { %s2825_s7 = sld [smem:[#allocation30_spill]]  ;;  %s1744_s26 = sadd.s32 4294967294, %s2329_s22  }
  0x31   : > { %s44_s30 = sadd.s32 1, %s2325_s21  ;;  %s53_s14 = sadd.s32 1, %s2317_s19 }
  0x32   : > { %p46_p13 = scmp.ge.s32.totalorder %s44_s30, 2  ;;  %p60_p0 = scmp.ne.s32.totalorder %s2317_s19, %s2313_s18 }
  0x33   : > { %p61_p2 = scmp.eq.s32.totalorder %s2329_s22, 0  ;;  %p66_p8 = scmp.ne.s32.totalorder %s2313_s18, %s2309_s17 }
  0x34   : > { %s2864_s30 = smov (%p46_p13, %s44_s30), 0  ;;  %p312_p9 = scmp.eq.s32.totalorder %s2440_s23, 1 }
  0x35   : > { %2826 = sst [smem:[#allocation23_spill]] %s2864_s30  ;;  %p2490_p4 = por %p61_p2, %p60_p0 }
  0x36   : > { %1943 = dma.hbm_to_vmem [thread:$0]  (!%p2454_p6), %s2825_s7, 512, %s370_s29, [#allocation12], %s2795_s12, %s2795_s12, %s2797_s13  }
  0x37   : > { %s48_s29 = ssub.s32 %s2325_s21, %s2864_s30  ;;  %p2501_p11 = por %p2807_p1, %p66_p8 }
  0x38   : > { %p51_p10 = scmp.eq.s32.totalorder %s48_s29, 0  ;;  %p2505_p12 = por %p312_p9, %p60_p0 }
  0x39   : > { %p318_p13 = scmp.eq.s32.totalorder %s1744_s26, 1  ;;  %p1965_p5 = scmp.lt.s32.totalorder %s2329_s22, 2 }
  0x3a   : > { %s2829_s25 = scalar_select %p2505_p12, 1, 0 }
  0x3b   : > { %s2510_s28 = scalar_select %p51_p10, %s2317_s19, %s53_s14  }
  0x3c   : > { %2830 = sst [smem:[#allocation24_spill]] %s2829_s25  ;;  %p2512_p2 = por %p318_p13, %p66_p8 }
  0x3d   : > { %2831 = sst [smem:[#allocation25_spill]] %s2510_s28  ;;  %s2803_s13 = sand.u32 1, %s2317_s19  }
  0x3e   : > { %s2832_s12 = scalar_select %p2512_p2, 1, 0 }
  0x3f   : > { %s2519_s3 = sshll.u32 %s2325_s21, 7  ;;  %s2523_s29 = sshll.u32 %s2803_s13, 3 }
  0x40   : > { %2833 = sst [smem:[#allocation26_spill]] %s2832_s12  ;;  %p2527_p0 = pnand %p1965_p5, %p2490_p4 }
  0x41   : > { %s421_s26 = sand.u32 1, %s2329_s22   ;;  %s2835_s1 = sld [smem:[#allocation27_spill]] }
  0x42   : > { %s425_s12 = scalar_lea.vmem [#allocation5], %s2523_s29  ;;  %s2537_s17 = scalar_lea.sflag [#allocation6], %s421_s26 }
  0x43   : > { %s432_s21 = sshll.u32 %s425_s12, 4  ;;  %p2809_p8 = pneg %p2527_p0  ;;  %s433_s21 = int_to_ptr.vmem [resolvable:$true] %s432_s21 }
  0x44   : > { %s2114_s15 = scalar_lea.vmem %s433_s21, 128  ;;  %s2335_s13 = smov [#allocation5]  }
  0x45   : > { %p2115_p9 = scmp.ne.s32.totalorder %s433_s21, %s2114_s15  ;;  %s2119_s11 = sshll.u32 %s2335_s13, 4  ;;  %s2120_s11 = int_to_ptr.vmem [resolvable:$false] %s2119_s11 }
  0x46   : > { %s2121_s22 = scalar_lea.vmem %s2120_s11, 256  ;;  %p2122_p10 = scmp.lt.s32.totalorder %s433_s21, %s2120_s11 }
  0x47   : > { %s430_s28 = scalar_lea.hbm %s2835_s1, %s2519_s3  ;;  %p2117_p5 = pnand %p2115_p9, %p2809_p8 }
  0x48   : > { %p2123_p13 = scmp.lt.s32.totalorder %s2121_s22, %s2114_s15 }
  0x49   : > { %p2118_p4 = pneg %p2117_p5 }
  0x4a   : > { %p2124_p1 = por %p2123_p13, %p2122_p10 }
  0x4c   : > { %p2125_p7 = pnand %p2124_p1, %p2118_p4 }
  0x4e   : > { %2128 = shalt.err (!%p2125_p7)
}
  0x4f   : > { %1953 = dma.hbm_to_vmem [thread:$0]  (!%p2527_p0), %s430_s28, 128, %s433_s21, %s2537_s17  }
  0x50   : > { %s2336_s12 = smov [#allocation10]   ;;  %s2337_s26 = smov [#allocation13]  }
  0x51   : > { %s353_s30 = sshll.u32 %s2336_s12, 4  ;;  %s385_s14 = sshll.u32 %s2337_s26, 4  ;;  %s354_s30 = int_to_ptr.vmem [resolvable:$true] %s353_s30  ;;  %s386_s14 = int_to_ptr.vmem [resolvable:$true] %s385_s14 }
  0x52   : > { %s2140_s1 = scalar_lea.vmem %s354_s30, 512  ;;  %p2836_p5 = pneg %p2454_p6 }
  0x53   : > { %p2141_p9 = scmp.ne.s32.totalorder %s354_s30, %s2140_s1  ;;  %p2148_p12 = scmp.lt.s32.totalorder %s354_s30, %s354_s30 }
  0x54   : > { %p2149_p10 = scmp.lt.s32.totalorder %s2140_s1, %s2140_s1 }
  0x55   : > { %p2143_p8 = pnand %p2141_p9, %p2836_p5 }
  0x56   : > { %p2150_p1 = por %p2149_p10, %p2148_p12 }
  0x57   : > { %p2144_p2 = pneg %p2143_p8 }
  0x59   : > { %p2151_p7 = pnand %p2150_p1, %p2144_p2 }
  0x5b   : > { %2154 = shalt.err (!%p2151_p7)
}
  0x5c   : > { %s2837_s11 = smov 8   ;;  %s2838_s21 = smov 128  }
  0x5d   : > { %s2839_s5 = sld [smem:[#allocation29_spill]]  ;;  %s2166_s28 = scalar_lea.vmem %s386_s14, 512 }
  0x5e   : > { %p2167_p4 = scmp.ne.s32.totalorder %s386_s14, %s2166_s28  ;;  %p2840_p8 = pmov %p2836_p5 }
  0x5f   : > { %p2174_p12 = scmp.lt.s32.totalorder %s386_s14, %s386_s14  ;;  %p2175_p2 = scmp.lt.s32.totalorder %s2166_s28, %s2166_s28 }
  0x60   : > { %p2169_p13 = pnand %p2167_p4, %p2840_p8 }
  0x61   : > { %p2176_p5 = por %p2175_p2, %p2174_p12 }
  0x62   : > { %p2170_p9 = pneg %p2169_p13 }
  0x63   : > { %1940 = dma.hbm_to_vmem [thread:$0]  (!%p2454_p6), %s2839_s5, 512, %s354_s30, [#allocation9], %s2838_s21, %s2838_s21, %s2837_s11  }
  0x64   : > { %p2177_p10 = pnand %p2176_p5, %p2170_p9 }
  0x66   : > { %2180 = shalt.err (!%p2177_p10)
}
  0x67   : > { %1946 = dma.hbm_to_vmem [thread:$0]  (!%p2454_p6), %s2792_s9, 512, %s386_s14, [#allocation12], %s2838_s21, %s2838_s21, %s2837_s11  }
  0x68   : > { %s412_s26 = scalar_lea.hbm %s2783_s0, %s2519_s3  ;;  %s406_s22 = scalar_lea.vmem [#allocation2], %s2523_s29 }
  0x69   : > { %s414_s13 = sshll.u32 %s406_s22, 4  ;;  %s448_s5 = scalar_lea.hbm %s2785_s2, %s2519_s3  ;;  %s415_s13 = int_to_ptr.vmem [resolvable:$true] %s414_s13 }
  0x6a   : > { %s2841_s10 = sand.u32 1, %s2317_s19   ;;  %s2194_s1 = scalar_lea.vmem %s415_s13, 128 }
  0x6b   : > { %s403_s25 = scalar_lea.sflag [#allocation3], %s2841_s10  ;;  %p2195_p1 = scmp.ne.s32.totalorder %s415_s13, %s2194_s1 }
  0x6c   : > { %p2842_p7 = pneg %p2527_p0  ;;  %s2338_s14 = smov [#allocation2]  }
  0x6d   : > { %s2199_s11 = sshll.u32 %s2338_s14, 4  ;;  %s2200_s11 = int_to_ptr.vmem [resolvable:$false] %s2199_s11 }
  0x6e   : > { %p2197_p4 = pnand %p2195_p1, %p2842_p7  ;;  %s2201_s21 = scalar_lea.vmem %s2200_s11, 256 }
  0x6f   : > { %p2202_p6 = scmp.lt.s32.totalorder %s415_s13, %s2200_s11  ;;  %p2203_p13 = scmp.lt.s32.totalorder %s2201_s21, %s2194_s1 }
  0x70   : > { %p2198_p8 = pneg %p2197_p4 }
  0x71   : > { %p2204_p9 = por %p2203_p13, %p2202_p6 }
  0x73   : > { %p2205_p12 = pnand %p2204_p9, %p2198_p8 }
  0x75   : > { %2208 = shalt.err (!%p2205_p12)
}
  0x76   : > { %1950 = dma.hbm_to_vmem [thread:$0]  (!%p2527_p0), %s412_s26, 128, %s415_s13, %s403_s25  }
  0x77   : > { %s443_s10 = scalar_lea.vmem [#allocation7], %s2523_s29  ;;  %p2843_p5 = pmov %p2842_p7 }
  0x78   : > { %s450_s15 = sshll.u32 %s443_s10, 4  ;;  %s2339_s30 = smov [#allocation7]   ;;  %s451_s15 = int_to_ptr.vmem [resolvable:$true] %s450_s15 }
  0x79   : > { %s2222_s12 = scalar_lea.vmem %s451_s15, 128  ;;  %s2227_s22 = sshll.u32 %s2339_s30, 4  ;;  %s2228_s22 = int_to_ptr.vmem [resolvable:$false] %s2227_s22 }
  0x7a   : > { %p2223_p2 = scmp.ne.s32.totalorder %s451_s15, %s2222_s12  ;;  %s2229_s27 = scalar_lea.vmem %s2228_s22, 256 }
  0x7b   : > { %p2230_p7 = scmp.lt.s32.totalorder %s451_s15, %s2228_s22  ;;  %p2231_p4 = scmp.lt.s32.totalorder %s2229_s27, %s2222_s12 }
  0x7c   : > { %p2225_p10 = pnand %p2223_p2, %p2843_p5 }
  0x7d   : > { %p2232_p8 = por %p2231_p4, %p2230_p7 }
  0x7e   : > { %p2226_p1 = pneg %p2225_p10 }
  0x80   : > { %p2233_p6 = pnand %p2232_p8, %p2226_p1 }
  0x82   : > { %2236 = shalt.err (!%p2233_p6)
}
  0x83   : > { %1956 = dma.hbm_to_vmem [thread:$0]  (!%p2527_p0), %s448_s5, 128, %s451_s15, %s2537_s17  }
  0x84   : > { %459 = sbr.rel (%p2445_p3) target bundleno = 1956 (0x7a4), region = 64  ;;  %s2600_s26 = sand.u32 (!%p2445_p3), 1, %s2313_s18  }
  0x85   : > { %s2603_s13 = sshll.u32 (!%p2445_p3), %s2600_s26, 3  ;;  %s462_s7 = scalar_lea.sflag (!%p2445_p3), [#allocation3], %s2600_s26 }
  0x86   : > { %s465_s28 = scalar_lea.vmem (!%p2445_p3), [#allocation2], %s2603_s13 }
  0x89   : > { %2288 = dma.done.wait (%p2501_p11), %s462_s7, 128  }
  0x8a   : > { %2290 = vsyncadd (%p2501_p11), %s462_s7, 4294967168  ;;  %s470_s3 = sand.u32 1, %s2440_s23   ;;  %s474_s17 = scalar_lea.vmem [#allocation5], %s2603_s13 }
  0x8b   : > { %s471_s5 = scalar_lea.sflag [#allocation6], %s470_s3 }
  0x8c   : > { %2292 = dma.done.wait (%p2501_p11), %s471_s5, 256  }
  0x8d   : > { %2294 = vsyncadd (%p2501_p11), %s471_s5, 4294967040  ;;  %s483_s24 = scalar_lea.vmem [#allocation7], %s2603_s13  ;;  %p2844_p3 = scmp.eq.s32.totalorder %s2440_s23, 0 }
  0x8f   : > { %2296 = dma.done.wait (%p2844_p3), [#allocation9], 1024   ;;  %p2845_p0 = pmov %p2844_p3 }
  0x91   : > { %2298 = vsyncadd (%p2845_p0), [#allocation9], 4294966272  ;;  %p2846_p13 = pmov %p2845_p0 }
  0x92   : > { %p2847_p9 = pmov %p2845_p0 }
  0x93   : > { %2300 = dma.done.wait (%p2846_p13), [#allocation12], 1024  }
  0x94   : > { %2302 = vsyncadd (%p2847_p9), [#allocation12], 4294966272  ;;  %v2340_v0 = vmov 0.0   ;;  %vm2341_vm0 = vmmov 0   ;;  %v639_v1 = vld [vmem:[#allocation10 + $0x18] sm:$0xff]  ;;  %v638_v3 = vld [vmem:[#allocation10 + $0x10] sm:$0xff] }
  0x95   : > { %1837 = vmatprep.subr.mxu1 %v2340_v0  ;;  %1826 = vmatprep.subr.mxu0 %v2340_v0  ;;  %v554_v2 = vld [vmem:[#allocation8 + $0x18] sm:$0xff]  ;;  %v553_v4 = vld [vmem:[#allocation8 + $0x10] sm:$0xff]  ;;  %v637_v5 = vld [vmem:[#allocation10 + $0x8] sm:$0xff]  ;;  %vm562_vm1 = vcmask 261120   ;;  %vm804_vm2 = vcmask 64512   ;;  %s2342_s11 = smov 120  }
  0x96   : > { %1845 = vmatprep.mubr.msk.f32.mxu1 %vm2341_vm0, %v2340_v0  ;;  %1834 = vmatprep.mubr.msk.f32.mxu0 %vm2341_vm0, %v2340_v0  ;;  %v552_v6 = vld [vmem:[#allocation8 + $0x8] sm:$0xff]  ;;  %v636_v7 = vld [vmem:[#allocation10] sm:$0xff]  ;;  %v548_v10 = vld [vmem:[%s465_s28] sm:$0xff]  ;;  %s2343_s21 = smov 112   ;;  %s2344_s10 = smov 104   ;;  %vm1478_vm3 = vcmask 130048  }
  0x97   : > { %1838 = vmatpush3.msra.mxu1 %v639_v1  ;;  %1827 = vmatpush3.msra.mxu0 %v554_v2  ;;  %v551_v8 = vld [vmem:[#allocation8] sm:$0xff]  ;;  %v1768_v11 = vld [vmem:[%s2789_s6] ss:$0 sm:$0xff]  ;;  %v723_v19 = vld [vmem:[#allocation11 + $0x18] sm:$0xff]  ;;  %s2345_s30 = smov 8   ;;  %s2346_s22 = smov 16  }
  0x98   : > { %1839 = vmatprep.subr.mxu1 %v2340_v0  ;;  %1828 = vmatprep.subr.mxu0 %v2340_v0  ;;  %v549_v9 = vld [vmem:[%s474_s17] sm:$0xff]  ;;  %v1766_v12 = vld [vmem:[%s2787_s4] ss:$0 sm:$0xff]  ;;  %s2347_s27 = smov 24   ;;  %vm1480_vm4 = vcmask 195584   ;;  %s2848_s25 = sld [smem:[#allocation24_spill]] }
  0x99   : > { %1840 = vmatpush3.msra.mxu1 %v638_v3  ;;  %1829 = vmatpush3.msra.mxu0 %v553_v4  ;;  %v722_v20 = vld [vmem:[#allocation11 + $0x10] sm:$0xff]  ;;  %v721_v21 = vld [vmem:[#allocation11 + $0x8] sm:$0xff]  ;;  %v720_v22 = vld [vmem:[#allocation11] sm:$0xff]  ;;  %s2849_s28 = sld [smem:[#allocation31_spill]]  ;;  %s1787_s3 = sshll.u32 %s2321_s20, 7 }
  0x9a   : > { %1841 = vmatprep.subr.mxu1 %v2340_v0  ;;  %1830 = vmatprep.subr.mxu0 %v2340_v0  ;;  %v550_v23 = vld [vmem:[%s483_s24] sm:$0xff]  ;;  %s547_s5 = scalar_lea.vmem [#allocation14], %s2603_s13  ;;  %s2850_s16 = sld [smem:[#allocation32_spill]] }
  0x9b   : > { %1842 = vmatpush3.msra.mxu1 %v637_v5  ;;  %1831 = vmatpush3.msra.mxu0 %v552_v6  ;;  %v1770_v33 = vld [vmem:[%s2791_s8] ss:$0 sm:$0xff]  ;;  %s1582_s17 = sshll.u32 %s547_s5, 4  ;;  %s1568_s14 = scalar_lea.sflag [#allocation4], %s2600_s26  ;;  %s1583_s17 = int_to_ptr.vmem [resolvable:$true] %s1582_s17 }
  0x9c   : > { %1843 = vmatprep.subr.mxu1 %v2340_v0  ;;  %1832 = vmatprep.subr.mxu0 %v2340_v0  ;;  %s2348_s20 = smov [#allocation14]  }
  0x9d   : > { %1844 = vmatpush3.msra.mxu1 %v636_v7  ;;  %1833 = vmatpush3.msra.mxu0 %v551_v8  ;;  %s2241_s13 = sshll.u32 %s2348_s20, 4  ;;  %s2242_s13 = int_to_ptr.vmem [resolvable:$false] %s2241_s13 }
  0x9e   : > { %1846 = vmatmul.mubr.msk.f32.vlgmr.msra.gmra.mxu1 %vm562_vm1, %v549_v9  ;;  %1835 = vmatmul.mubr.msk.f32.vlgmr.msra.gmra.mxu0 %vm562_vm1, %v548_v10  ;;  %p2851_p12 = scmp.ne.s32.totalorder %s2848_s25, 0  ;;  %p2244_p10 = scmp.lt.s32.totalorder %s1583_s17, %s2242_s13 }
  0x9f   : > { %1859 = vmatprep.subr.mxu1 %v2340_v0  ;;  %1861 = vmatprep.mubr.msk.f32.mxu1 %vm2341_vm0, %v2340_v0 }
  0xa0   : > { %1848 = vmatprep.subr.mxu0 %v2340_v0  ;;  %1856 = vmatprep.mubr.msk.f32.mxu0 %vm2341_vm0, %v2340_v0  ;;  %s2740_s1 = scalar_lea.hbm %s2850_s16, %s1787_s3 }
  0xa1   : > { %1849 = vmatpush3.msra.mxu0 %v723_v19 }
  0xa2   : > { %1850 = vmatprep.subr.mxu0 %v2340_v0 }
  0xa3   : > { %1851 = vmatpush3.msra.mxu0 %v722_v20 }
  0xa4   : > { %1852 = vmatprep.subr.mxu0 %v2340_v0 }
  0xa5   : > { %1853 = vmatpush3.msra.mxu0 %v721_v21 }
  0xa6   : > { %1854 = vmatprep.subr.mxu0 %v2340_v0 }
  0xa7   : > { %1855 = vmatpush3.msra.mxu0 %v720_v22 }
  0xa8   : > { %1857 = vmatmul.mubr.msk.f32.vlgmr.msra.gmra.mxu0 %vm562_vm1, %v550_v23  ;;  %1879 = vmatprep.subr.mxu0 %v2340_v0 }
  0xa9   : > { %1881 = vmatprep.mubr.msk.f32.mxu0 %vm2341_vm0, %v2340_v0 }
 0x15e   : > { %v716_v13 = vpop.f32.mrf.mxu1  ;;  %v632_v14 = vpop.f32.mrf.mxu0 }
 0x15f   : > { %v717_v15 = vadd.f32 %v1768_v11, %v716_v13  ;;  %v633_v16 = vadd.f32 %v1766_v12, %v632_v14 }
 0x160   : > { %v1847_v17 = vpop.f32.mrf.mxu1  ;;  %v1836_v18 = vpop.f32.mrf.mxu0 }
 0x161   : > { %968 = vrot.lane.b32.xlu1 %v717_v15, %s2342_s11  ;;  %1860 = vmatpush3.xpose.msk.msra.mxu1 %vm804_vm2, %v717_v15 }
 0x162   : > { %1864 = vmatprep.subr.mxu1 %v2340_v0 }
 0x164   : > { %1862 = vmatmul.mubr.msk.f32.vlgmr.msra.gmra.mxu1 %vm804_vm2, %v633_v16 }
 0x165   : > { %966 = vrot.lane.b32.xlu1 %v633_v16, %s2342_s11  ;;  %1866 = vmatprep.mubr.msk.f32.mxu1 %vm2341_vm0, %v2340_v0 }
 0x168   : > { %v800_v34 = vpop.f32.mrf.mxu0 }
 0x169   : > { %1133 = vrot.lane.b32.xlu1 %v633_v16, %s2343_s21  ;;  %v2680_v35 = vadd.f32 %v1770_v33, %v800_v34 }
 0x16a   : > { %v1858_v36 = vpop.f32.mrf.mxu0 }
 0x16b   : > { %1865 = vmatpush3.msra.mxu1 %v2680_v35 }
 0x16c   : > { %1869 = vmatprep.subr.mxu1 %v2340_v0 }
 0x16d   : > { %1301 = vrot.lane.b32.xlu1 %v717_v15, %s2344_s10 }
 0x171   : > { %1299 = vrot.lane.b32.xlu1 %v633_v16, %s2344_s10 }
 0x1d3   : > { %v969_v37 = vpop.permute.xlu1 %968 }
 0x1d7   : > { %v967_v38 = vpop.permute.xlu1 %966 }
 0x1db   : > { %v1134_v39 = vpop.permute.xlu1 %1133 }
 0x1df   : > { %v1302_v42 = vpop.permute.xlu1 %1301 }
 0x1e3   : > { %v1300_v43 = vpop.permute.xlu1 %1299 }
 0x224   : > { %v877_v24 = vpop.f32.mrf.mxu1 }
 0x225   : > { %v881_v25 = vmul.f32 0.35355338, %v877_v24  ;;  %v1485_v24 = vld [vmem:[#allocation13 + $0x18] sm:$0xff] }
 0x226   : > { %v1863_v26 = vpop.f32.mrf.mxu1 }
 0x227   : > { %v882_v27 = vsel %vm804_vm2, %v881_v25, -inf  ;;  %v1483_v26 = vld [vmem:[#allocation13 + $0x8] sm:$0xff] }
 0x228   : > { %883 = vmax.xlane.f32.xlu0 %v882_v27  ;;  %v1482_v27 = vld [vmem:[#allocation13] sm:$0xff] }
 0x2b1   : > { %v884_v28 = vpop.xlane.xlu0 %883 }
 0x2b2   : > { %v885_v29 = vsub.f32 %v881_v25, %v884_v28  ;;  %v1484_v25 = vld [vmem:[#allocation13 + $0x10] sm:$0xff] }
 0x2b4   : > { %v886_v30 = vmul.f32 1.442695, %v885_v29 }
 0x2b6   : > { %2033 = vpow2.f32 %v886_v30 }
 0x2c3   : > { %v2034_v31 = vpop.eup %2033 }
 0x2c4   : > { %v888_v32 = vsel %vm804_vm2, %v2034_v31, 0.0 }
 0x2c5   : > { %889 = vadd.xlane.f32.xlu0 %v888_v32 }
 0x2db   : > { %1135 = vrot.lane.b32.xlu0 %v717_v15, %s2343_s21 }
 0x34e   : > { %v890_v40 = vpop.xlane.xlu0 %889 }
 0x34f   : > { %2035 = vrcp.f32 %v890_v40 }
 0x352   : > { %v1136_v41 = vpop.permute.xlu0 %1135 }
 0x353   : > { %1880 = vmatpush3.xpose.msk.msra.mxu0 %vm804_vm2, %v1136_v41 }
 0x354   : > { %1889 = vmatprep.subr.mxu0 %v2340_v0 }
 0x356   : > { %1882 = vmatmul.mubr.msk.f32.vlgmr.msra.gmra.mxu0 %vm804_vm2, %v1134_v39  ;;  %v1784_v39 = vld [vmem:[%s2849_s28] ss:$0 sm:$0xff] }
 0x357   : > { %1890 = vmatpush3.xpose.msk.msra.mxu0 %vm804_vm2, %v1302_v42  ;;  %1891 = vmatprep.mubr.msk.f32.mxu0 %vm2341_vm0, %v2340_v0 }
 0x358   : > { %1899 = vmatprep.subr.mxu0 %v2340_v0 }
 0x35a   : > { %1892 = vmatmul.mubr.msk.f32.vlgmr.msra.gmra.mxu0 %vm804_vm2, %v1300_v43 }
 0x35b   : > { %1907 = vmatprep.mubr.msk.f32.mxu0 %vm2341_vm0, %v2340_v0  ;;  %1900 = vmatpush3.msra.mxu0 %v1485_v24 }
 0x35c   : > { %v2036_v44 = vpop.eup %2035  ;;  %1901 = vmatprep.subr.mxu0 %v2340_v0 }
 0x35d   : > { %v892_v45 = vmul.f32 %v2036_v44, %v2034_v31  ;;  %1902 = vmatpush3.msra.mxu0 %v1484_v25 }
 0x35e   : > { %1903 = vmatprep.subr.mxu0 %v2340_v0 }
 0x35f   : > { %1867 = vmatmul.mubr.msk.f32.vlgmr.msra.gmra.mxu1 %vm804_vm2, %v892_v45  ;;  %1904 = vmatpush3.msra.mxu0 %v1483_v26 }
 0x360   : > { %1870 = vmatpush3.xpose.msk.msra.mxu1 %vm804_vm2, %v969_v37  ;;  %1871 = vmatprep.mubr.msk.f32.mxu1 %vm2341_vm0, %v2340_v0 }
 0x361   : > { %1874 = vmatprep.subr.mxu1 %v2340_v0  ;;  %1905 = vmatprep.subr.mxu0 %v2340_v0 }
 0x362   : > { %1906 = vmatpush3.msra.mxu0 %v1482_v27 }
 0x363   : > { %1872 = vmatmul.mubr.msk.f32.vlgmr.msra.gmra.mxu1 %vm804_vm2, %v967_v38 }
 0x364   : > { %1876 = vmatprep.mubr.msk.f32.mxu1 %vm2341_vm0, %v2340_v0 }
 0x416   : > { %v1207_v46 = vpop.f32.mrf.mxu0 }
 0x417   : > { %v1211_v47 = vmul.f32 0.35355338, %v1207_v46 }
 0x418   : > { %v1883_v48 = vpop.f32.mrf.mxu0 }
 0x419   : > { %v1212_v49 = vsel %vm804_vm2, %v1211_v47, -inf }
 0x41a   : > { %1213 = vmax.xlane.f32.xlu0 %v1212_v49  ;;  %v1373_v50 = vpop.f32.mrf.mxu0 }
 0x41b   : > { %v1377_v57 = vmul.f32 0.35355338, %v1373_v50 }
 0x41c   : > { %v1893_v51 = vpop.f32.mrf.mxu0 }
 0x41d   : > { %v1378_v59 = vsel %vm804_vm2, %v1377_v57, -inf }
 0x41f   : > { %v2704_v52 = vpop.f32.mrf.mxu1 }
 0x421   : > { %v1868_v53 = vpop.f32.mrf.mxu1 }
 0x423   : > { %v1040_v54 = vpop.f32.mrf.mxu1 }
 0x424   : > { %v1044_v55 = vmul.f32 0.35355338, %v1040_v54 }
 0x425   : > { %v1873_v56 = vpop.f32.mrf.mxu1 }
 0x426   : > { %v1045_v58 = vsel %vm804_vm2, %v1044_v55, -inf }
 0x427   : > { %1046 = vmax.xlane.f32.xlu1 %v1045_v58 }
 0x42b   : > { %1379 = vmax.xlane.f32.xlu1 %v1378_v59 }
 0x4a3   : > { %v1214_v60 = vpop.xlane.xlu0 %1213 }
 0x4a4   : > { %v1215_v61 = vsub.f32 %v1211_v47, %v1214_v60 }
 0x4a6   : > { %v1216_v62 = vmul.f32 1.442695, %v1215_v61 }
 0x4a8   : > { %2037 = vpow2.f32 %v1216_v62 }
 0x4b0   : > { %v1047_v63 = vpop.xlane.xlu1 %1046 }
 0x4b1   : > { %v1048_v8 = vsub.f32 %v1044_v55, %v1047_v63 }
 0x4b3   : > { %v1049_v9 = vmul.f32 1.442695, %v1048_v8 }
 0x4b4   : > { %v1380_v1 = vpop.xlane.xlu1 %1379 }
 0x4b5   : > { %v2038_v2 = vpop.eup %2037  ;;  %v1381_v3 = vsub.f32 %v1377_v57, %v1380_v1 }
 0x4b6   : > { %v1218_v4 = vsel %vm804_vm2, %v2038_v2, 0.0 }
 0x4b7   : > { %v1382_v5 = vmul.f32 1.442695, %v1381_v3  ;;  %1219 = vadd.xlane.f32.xlu0 %v1218_v4 }
 0x4b9   : > { %2039 = vpow2.f32 %v1382_v5 }
 0x4ba   : > { %2041 = vpow2.f32 %v1049_v9 }
 0x4c6   : > { %v2040_v6 = vpop.eup %2039 }
 0x4c7   : > { %v1384_v7 = vsel %vm804_vm2, %v2040_v6, 0.0  ;;  %v2042_v10 = vpop.eup %2041 }
 0x4c8   : > { %1385 = vadd.xlane.f32.xlu1 %v1384_v7  ;;  %v1051_v11 = vsel %vm804_vm2, %v2042_v10, 0.0 }
 0x4cd   : > { %1057 = vrot.lane.b32.xlu0 %v2680_v35, %s2342_s11  ;;  %s2237_s11 = scalar_lea.vmem %s1583_s17, 128 }
 0x4ce   : > { %p2238_p11 = scmp.ne.s32.totalorder %s1583_s17, %s2237_s11 }
 0x4d0   : > { %p2239_p2 = pnand %p2238_p11, %p2851_p12 }
 0x4d2   : > { %p2240_p5 = pneg %p2239_p2 }
 0x4d9   : > { %1223 = vrot.lane.b32.xlu1 %v2680_v35, %s2343_s21  ;;  %s2243_s21 = scalar_lea.vmem %s2242_s13, 256 }
 0x4da   : > { %p2245_p1 = scmp.lt.s32.totalorder %s2243_s21, %s2237_s11 }
 0x4dc   : > { %p2246_p7 = por %p2245_p1, %p2244_p10 }
 0x4de   : > { %p2247_p4 = pnand %p2246_p7, %p2240_p5 }
 0x4fd   : > { %1052 = vadd.xlane.f32.xlu1 %v1051_v11 }
 0x50e   : > { %1389 = vrot.lane.b32.xlu1 %v2680_v35, %s2344_s10 }
 0x540   : > { %v1220_v12 = vpop.xlane.xlu0 %1219 }
 0x544   : > { %v1058_v13 = vpop.permute.xlu0 %1057 }
 0x545   : > { %1875 = vmatpush3.msra.mxu1 %v1058_v13 }
 0x546   : > { %1884 = vmatprep.subr.mxu1 %v2340_v0 }
 0x551   : > { %v1386_v14 = vpop.xlane.xlu1 %1385 }
 0x555   : > { %v1224_v15 = vpop.permute.xlu1 %1223 }
 0x586   : > { %v1053_v16 = vpop.xlane.xlu1 %1052 }
 0x587   : > { %2043 = vrcp.f32 %v1053_v16 }
 0x588   : > { %2045 = vrcp.f32 %v1220_v12 }
 0x589   : > { %2047 = vrcp.f32 %v1386_v14 }
 0x58a   : > { %v1390_v22 = vpop.permute.xlu1 %1389 }
 0x594   : > { %v2044_v17 = vpop.eup %2043 }
 0x595   : > { %v1055_v18 = vmul.f32 %v2044_v17, %v2042_v10  ;;  %v2046_v19 = vpop.eup %2045 }
 0x596   : > { %v1222_v20 = vmul.f32 %v2046_v19, %v2038_v2  ;;  %v2048_v21 = vpop.eup %2047 }
 0x597   : > { %1877 = vmatmul.mubr.msk.f32.vlgmr.msra.gmra.mxu1 %vm804_vm2, %v1055_v18  ;;  %v1388_v23 = vmul.f32 %v2048_v21, %v2040_v6 }
 0x598   : > { %1885 = vmatpush3.msra.mxu1 %v1224_v15  ;;  %1886 = vmatprep.mubr.msk.f32.mxu1 %vm2341_vm0, %v2340_v0 }
 0x599   : > { %1894 = vmatprep.subr.mxu1 %v2340_v0 }
 0x59b   : > { %1887 = vmatmul.mubr.msk.f32.vlgmr.msra.gmra.mxu1 %vm804_vm2, %v1222_v20 }
 0x59c   : > { %1895 = vmatpush3.msra.mxu1 %v1390_v22  ;;  %1896 = vmatprep.mubr.msk.f32.mxu1 %vm2341_vm0, %v2340_v0 }
 0x59f   : > { %1897 = vmatmul.mubr.msk.f32.vlgmr.msra.gmra.mxu1 %vm804_vm2, %v1388_v23 }
 0x657   : > { %v1129_v28 = vpop.f32.mrf.mxu1 }
 0x658   : > { %1466 = vrot.lane.b32.xlu0 %v1129_v28, %s2345_s30 }
 0x659   : > { %v1878_v29 = vpop.f32.mrf.mxu1 }
 0x65b   : > { %v1295_v30 = vpop.f32.mrf.mxu1 }
 0x65c   : > { %1470 = vrot.lane.b32.xlu1 %v1295_v30, %s2346_s22 }
 0x65d   : > { %v1888_v31 = vpop.f32.mrf.mxu1 }
 0x65f   : > { %v1461_v32 = vpop.f32.mrf.mxu1 }
 0x660   : > { %1474 = vrot.lane.b32.xlu0 %v1461_v32, %s2347_s27 }
 0x661   : > { %v1898_v33 = vpop.f32.mrf.mxu1 }
 0x6ca   : > { %v1467_v34 = vpop.permute.xlu0 %1466 }
 0x6cb   : > { %v1477_v0 = vsel %vm804_vm2, %v2704_v52, %v1467_v34 }
 0x6ce   : > { %v1471_v35 = vpop.permute.xlu1 %1470 }
 0x6cf   : > { %v1479_v36 = vsel %vm1478_vm3, %v1477_v0, %v1471_v35 }
 0x6d2   : > { %v1475_v37 = vpop.permute.xlu0 %1474 }
 0x6d3   : > { %v1481_v38 = vsel %vm1480_vm4, %v1479_v36, %v1475_v37 }
 0x6d4   : > { %1908 = vmatmul.mubr.msk.f32.vlgmr.msra.gmra.mxu0 %vm562_vm1, %v1481_v38 }
 0x794   : > { %v1562_v40 = vpop.f32.mrf.mxu0 }
 0x795   : > { %v1563_v41 = vadd.f32 %v1784_v39, %v1562_v40 }
 0x796   : > { %v1909_v42 = vpop.f32.mrf.mxu0 }
 0x797   : > { %1566 = vst.msk [vmem:[%s547_s5] sm:$0xff] %vm562_vm1, %v1563_v41 }
 0x798   : > { %2250 = shalt.err (!%p2247_p4)
}
 0x799   : > { %s2251_s10 = scalar_lea.hbm %s2740_s1, 128  ;;  %s2255_s12 = scalar_lea.hbm %s2850_s16, 256 }
 0x79a   : > { %p2252_p8 = scmp.ne.s32.totalorder %s2740_s1, %s2251_s10  ;;  %p2256_p0 = scmp.lt.s32.totalorder %s2740_s1, %s2850_s16 }
 0x79b   : > { %p2257_p13 = scmp.lt.s32.totalorder %s2255_s12, %s2251_s10 }
 0x79c   : > { %p2253_p6 = pnand %p2252_p8, %p2851_p12 }
 0x79d   : > { %p2258_p9 = por %p2257_p13, %p2256_p0 }
 0x79e   : > { %p2254_p3 = pneg %p2253_p6 }
 0x7a0   : > { %p2259_p11 = pnand %p2258_p9, %p2254_p3 }
 0x7a2   : > { %2262 = shalt.err (!%p2259_p11)
}
 0x7a3   : > { %1932 = dma.vmem_to_hbm [thread:$0]  (%p2851_p12), %s1583_s17, 128, %s2740_s1, %s1568_s14  }
 0x7a4 PF: > { %s2852_s27 = sld [smem:[#allocation20_spill]] }
 0x7a5   : > { %s2853_s29 = sld [smem:[#allocation26_spill]] }
 0x7a6   : > { %s2854_s7 = sld [smem:[#allocation22_spill]] }
 0x7aa   : > { %s1594_s28 = sand.u32 1, %s2852_s27  }
 0x7ab   : > { %p2855_p2 = scmp.ne.s32.totalorder %s2853_s29, 0  ;;  %s1595_s3 = scalar_lea.sflag [#allocation4], %s1594_s28 }
 0x7ac   : > { %p2856_p5 = scmp.ge.s32.totalorder %s2854_s7, 2 }
 0x7ae   : > { %p1958_p10 = pnand %p2856_p5, %p2855_p2 }
 0x7b0   : > { %p1959_p1 = pneg %p1958_p10 }
 0x7b2   : > { %2304 = dma.done.wait (%p1959_p1), %s1595_s3, 128  }
 0x7b3   : > { %2306 = vsyncadd (%p1959_p1), %s1595_s3, 4294967168  ;;  %s32_s22 = sadd.s32 1, %s2854_s7   ;;  %s2857_s25 = sld [smem:[#allocation25_spill]] }
 0x7b4   : > { %p29_p7 = scmp.ge.s32.totalorder %s32_s22, 4   ;;  %s2858_s20 = sld [smem:[#allocation21_spill]] }
 0x7b5   : > { %s2859_s21 = sld [smem:[#allocation23_spill]]  ;;  %s2860_s17 = smov %s2313_s18 }
 0x7b6   : > { %s2861_s18 = smov %s2317_s19  ;;  %31 = sbr.rel (!%p29_p7) target bundleno = 17 (0x11), region = 149 }
 0x7b9   : > { %s2862_s19 = smov %s2857_s25 }
 0x7bb   :  { %1600 = vsyncpa [#allocation3], 1 }
 0x7bc   :  { %1602 = vsyncpa [#allocation3 + $0x1], 1 }
 0x7bd   :  { %1603 = vsyncpa [#allocation6], 1 }
 0x7be   :  { %1605 = vsyncpa [#allocation6 + $0x1], 1 }
 0x7bf   :  { %1606 = vsyncpa [#allocation9], 1 }
 0x7c0   :  { %1607 = vsyncpa [#allocation12], 1 }
 0x7c1   :  { %1608 = vsyncpa [#allocation4], 1 }
 0x7c2   :  { %1610 = vsyncpa [#allocation4 + $0x1], 1 }

</bundles_post_ra>
